<compile_context>
chip_gen: v6e
topology: v6e:2x2x1
jax: 0.10.0
libtpu: 0.0.40
codegen_flags: <defaults>
</compile_context>

<pallas_src>
import functools

import numpy as np
import jax
import jax.numpy as jnp
from jax import lax
from jax.experimental import pallas as pl
from jax.experimental.pallas import tpu as pltpu


def _round_up(x, m):
    return ((x + m - 1) // m) * m


def _loim_ce_kernel(scaler_ref, x_ref, wt_ref, label_ref, loss_ref,
                    m_sc, l_sc, pick_sc, *, num_classes, padded_classes):
    """Streaming scaled cross-entropy over class tiles (online log-sum-exp).

    scaler_ref: [1]            f32 SMEM   oim_scaler
    x_ref:      [tm, D_pad]    f32 VMEM   feature rows (zero padded)
    wt_ref:     [D_pad, tk_c]  f32 VMEM   prototype bank tile (pre-transposed)
    label_ref:  [tm, 1]        i32 VMEM   class id per row, -1 = masked row
    loss_ref:   [tm, 1]        f32 VMEM   per-row CE (written at last class tile)
    m_sc/l_sc/pick_sc: [tm,1]  f32 VMEM   online-LSE running state
    """
    c = pl.program_id(1)

    @pl.when(c == 0)
    def _():
        m_sc[...] = jnp.full_like(m_sc, -1e30)
        l_sc[...] = jnp.zeros_like(l_sc)
        pick_sc[...] = jnp.zeros_like(pick_sc)

    # Scale X (tm*D VPU mults) instead of the logits (tm*C): matmul is linear.
    x = x_ref[...] * scaler_ref[0]
    # f32 in / f32 accumulate; bf16 X/W would halve W-stream traffic on v6e/v7x
    # but is kept f32 here to hold the 1e-4 tolerance vs. the f32 reference.
    logits = jnp.dot(x, wt_ref[...], preferred_element_type=jnp.float32)

    tm, tk_c = logits.shape
    col = lax.broadcasted_iota(jnp.int32, (tm, tk_c), 1) + c * tk_c
    if padded_classes > num_classes:       # static: emitted only if C was padded
        logits = jnp.where(col < num_classes, logits, -1e30)

    labels = label_ref[...]                                    # [tm, 1]
    onehot = col == labels                                     # [tm, tk_c]
    pick_sc[...] += jnp.sum(jnp.where(onehot, logits, 0.0), axis=-1, keepdims=True)

    m_prev = m_sc[...]
    m_new = jnp.maximum(m_prev, jnp.max(logits, axis=-1, keepdims=True))
    l_sc[...] = (l_sc[...] * jnp.exp(m_prev - m_new)
                 + jnp.sum(jnp.exp(logits - m_new), axis=-1, keepdims=True))
    m_sc[...] = m_new

    @pl.when(c == pl.num_programs(1) - 1)
    def _():
        valid = (labels >= 0).astype(jnp.float32)              # mask bg / padding
        lse = m_sc[...] + jnp.log(l_sc[...])
        loss_ref[...] = (lse - pick_sc[...]) * valid           # -log softmax[label]


def prepare_prototype_bank(lut, cq):
    """One-time prep: W_T = cat([lut, cq], 0).T, zero-padded to tile multiples.

    Call this when lut/cq change (i.e. after the training-time buffer update),
    NOT per forward step — avoids re-concatenating / re-transposing the bank
    in HBM on every call.
    """
    w = jnp.concatenate([jnp.asarray(lut, jnp.float32),
                         jnp.asarray(cq, jnp.float32)], axis=0)      # [C, D]
    num_classes, d = w.shape
    tk_c = min(512, _round_up(num_classes, 128))     # 128-aligned class tile
    c_pad = _round_up(num_classes, tk_c)
    d_pad = _round_up(d, 128)                        # lane-dense feature dim
    w_t = jnp.pad(w.T, ((0, d_pad - d), (0, c_pad - num_classes)))   # [D_pad, C_pad]
    return w_t, int(num_classes)


@functools.partial(jax.jit, static_argnames=("num_classes",))
def loim_loss_forward(inputs, roi_label, ious, w_t, num_classes, oim_scaler):
    """Forward loss of LOIMLoss. inputs [N, D], roi_label [N] (0 = background)."""
    del ious  # only used by the backward-pass buffer update, not the forward loss

    n, d = inputs.shape
    d_pad, c_pad = w_t.shape
    tk_c = min(512, c_pad)
    assert c_pad % tk_c == 0 and d_pad % 128 == 0 and d_pad >= d

    # On-device background masking (no host sync / boolean gather).
    label = roi_label.astype(jnp.int32) - 1                           # [N]

    tm = min(256, _round_up(max(n, 8), 8))                            # row tile
    n_pad = _round_up(n, tm)
    x = jnp.pad(inputs.astype(jnp.float32), ((0, n_pad - n), (0, d_pad - d)))
    lab = jnp.pad(label, (0, n_pad - n), constant_values=-1).reshape(n_pad, 1)
    scaler = jnp.asarray(oim_scaler, jnp.float32).reshape(1)

    n_row_blocks = n_pad // tm
    n_cls_blocks = c_pad // tk_c

    # Explicit VMEM budget (double-buffered X / W_T tiles + logits temporaries),
    # capped well under v7x's 64 MiB physical VMEM.
    vmem_need = 4 * (2 * tm * d_pad + 2 * d_pad * tk_c + 6 * tm * tk_c + 32 * tm)
    vmem_limit = int(min(48 * 1024 * 1024, max(16 * 1024 * 1024, 2 * vmem_need)))

    kernel = functools.partial(_loim_ce_kernel,
                               num_classes=num_classes, padded_classes=c_pad)

    per_row = pl.pallas_call(
        kernel,
        out_shape=jax.ShapeDtypeStruct((n_pad, 1), jnp.float32),
        grid=(n_row_blocks, n_cls_blocks),
        in_specs=[
            pl.BlockSpec(memory_space=pltpu.SMEM),              # oim_scaler
            pl.BlockSpec((tm, d_pad), lambda i, c: (i, 0)),     # X rows (resident over c)
            pl.BlockSpec((d_pad, tk_c), lambda i, c: (0, c)),   # W_T class tile (streamed)
            pl.BlockSpec((tm, 1), lambda i, c: (i, 0)),         # labels
        ],
        out_specs=pl.BlockSpec((tm, 1), lambda i, c: (i, 0)),   # per-row CE
        scratch_shapes=[pltpu.VMEM((tm, 1), jnp.float32)] * 3,  # m, l, picked
        compiler_params=pltpu.CompilerParams(
            dimension_semantics=("parallel", "arbitrary"),
            vmem_limit_bytes=vmem_limit),
    )(scaler, x, w_t, lab)

    count = jnp.sum((label >= 0).astype(jnp.float32))
    loss = jnp.sum(per_row) / count          # 0/0 -> nan for an empty batch ...
    return jnp.nan_to_num(loss)              # ... matching torch.nan_to_num


def loim_loss(inputs, roi_label, ious, lut, cq, oim_scaler):
    """Convenience wrapper matching the module call. In a training loop, hoist
    prepare_prototype_bank() and reuse w_t until lut/cq change."""
    w_t, num_classes = prepare_prototype_bank(lut, cq)
    return loim_loss_forward(inputs, roi_label, ious, w_t, num_classes, oim_scaler)


def _reference_loss(inputs, roi_label, lut, cq, oim_scaler):
    """Pure-jnp reference of the same forward math (verification only)."""
    targets = np.asarray(roi_label)
    label = targets - 1
    inds = label >= 0
    label = jnp.asarray(label[inds].astype(np.int32))
    x = jnp.asarray(np.asarray(inputs)[inds].astype(np.float32))
    w = jnp.concatenate([lut, cq], axis=0)
    logits = (x @ w.T) * oim_scaler
    logp = jax.nn.log_softmax(logits, axis=-1)
    per_row = -jnp.take_along_axis(logp, label[:, None], axis=-1)[:, 0]
    return jnp.nan_to_num(jnp.mean(per_row))


if __name__ == "__main__":
    # Module hyper-params (small, consistent with LOIMLoss.__init__ shapes)
    num_features = 32
    num_pids = 16
    num_cq_size = 8
    oim_scaler = 30.0
    n_rois = 10  # total RoIs before background filtering

    key = jax.random.PRNGKey(0)
    k1, k2, k3, k4, k5 = jax.random.split(key, 5)

    inputs = jax.random.normal(k1, (n_rois, num_features), jnp.float32)
    inputs = inputs / jnp.linalg.norm(inputs, axis=1, keepdims=True)
    # roi_label values: 0 = background (masked), 1..num_pids = labeled ids
    roi_label = jax.random.randint(k2, (n_rois,), 0, num_pids + 1)
    ious = jax.random.uniform(k3, (n_rois,), jnp.float32)

    # Buffers: module registers zeros; seed deterministically with L2-normalized
    # rows so the synthetic test is non-degenerate.
    lut = jax.random.normal(k4, (num_pids, num_features), jnp.float32)
    lut = lut / jnp.linalg.norm(lut, axis=1, keepdims=True)
    cq = jax.random.normal(k5, (num_cq_size, num_features), jnp.float32)
    cq = cq / jnp.linalg.norm(cq, axis=1, keepdims=True)

    # Hoisted bank prep (done once), jitted forward (no host-side filtering).
    w_t, num_classes = prepare_prototype_bank(lut, cq)
    loss = loim_loss_forward(inputs, roi_label, ious, w_t, num_classes, oim_scaler)
    loss = jax.block_until_ready(loss)

    ref = jax.block_until_ready(_reference_loss(inputs, roi_label, lut, cq, oim_scaler))
    np.testing.assert_allclose(np.asarray(loss), np.asarray(ref), rtol=1e-4, atol=1e-4)

    print("KERNEL_OK")
</pallas_src>

<mosaic_0001>
module attributes {stable_mosaic.version = 11 : i64} {
  func.func @_loim_ce_kernel(%arg0: i32, %arg1: i32, %arg2: memref<1xf32, #tpu.memory_space<smem>>, %arg3: memref<16x128xf32, #tpu.memory_space<vmem>>, %arg4: memref<128x128xf32, #tpu.memory_space<vmem>>, %arg5: memref<16x1xi32, #tpu.memory_space<vmem>>, %arg6: memref<16x1xf32, #tpu.memory_space<vmem>>, %arg7: memref<16x1xf32, #tpu.memory_space<vmem>>, %arg8: memref<16x1xf32, #tpu.memory_space<vmem>>, %arg9: memref<16x1xf32, #tpu.memory_space<vmem>>) attributes {dimension_semantics = [#tpu.dimension_semantics<parallel>, #tpu.dimension_semantics<arbitrary>], iteration_bounds = array<i64: 1, 1>, scalar_prefetch = 0 : i64, scratch_operands = 3 : i64, tpu.core_type = #tpu.core_type<tc>, window_params = [{transform_indices = @transform_0, window_bounds = array<i64: 1>}, {transform_indices = @transform_1, window_bounds = array<i64: 16, 128>}, {transform_indices = @transform_2, window_bounds = array<i64: 128, 128>}, {transform_indices = @transform_3, window_bounds = array<i64: 16, 1>}, {transform_indices = @transform_4, window_bounds = array<i64: 16, 1>}]} {
    %c0_i32 = arith.constant 0 : i32
    %0 = arith.cmpi eq, %arg1, %c0_i32 : i32
    %1 = arith.extui %0 : i1 to i32
    %c0_i32_0 = arith.constant 0 : i32
    %2 = arith.cmpi ne, %1, %c0_i32_0 : i32
    scf.if %2 {
      %cst_26 = arith.constant -1.000000e+30 : f32
      %46 = vector.broadcast %cst_26 : f32 to vector<16x1xf32>
      %c0_27 = arith.constant 0 : index
      %c0_28 = arith.constant 0 : index
      %47 = vector.load %arg7[%c0_27, %c0_28] : memref<16x1xf32, #tpu.memory_space<vmem>>, vector<16x1xf32>
      tpu.vector_store %arg7[%c0_27, %c0_28], %46 {strides = array<i32>} : memref<16x1xf32, #tpu.memory_space<vmem>>, vector<16x1xf32>,
      %cst_29 = arith.constant 0.000000e+00 : f32
      %48 = vector.broadcast %cst_29 : f32 to vector<16x1xf32>
      %c0_30 = arith.constant 0 : index
      %c0_31 = arith.constant 0 : index
      %49 = vector.load %arg8[%c0_30, %c0_31] : memref<16x1xf32, #tpu.memory_space<vmem>>, vector<16x1xf32>
      tpu.vector_store %arg8[%c0_30, %c0_31], %48 {strides = array<i32>} : memref<16x1xf32, #tpu.memory_space<vmem>>, vector<16x1xf32>,
      %cst_32 = arith.constant 0.000000e+00 : f32
      %50 = vector.broadcast %cst_32 : f32 to vector<16x1xf32>
      %c0_33 = arith.constant 0 : index
      %c0_34 = arith.constant 0 : index
      %51 = vector.load %arg9[%c0_33, %c0_34] : memref<16x1xf32, #tpu.memory_space<vmem>>, vector<16x1xf32>
      tpu.vector_store %arg9[%c0_33, %c0_34], %50 {strides = array<i32>} : memref<16x1xf32, #tpu.memory_space<vmem>>, vector<16x1xf32>,
    } else {
    }
    %c0 = arith.constant 0 : index
    %c0_1 = arith.constant 0 : index
    %3 = vector.load %arg3[%c0, %c0_1] : memref<16x128xf32, #tpu.memory_space<vmem>>, vector<16x128xf32>
    %c0_2 = arith.constant 0 : index
    %4 = memref.load %arg2[%c0_2] : memref<1xf32, #tpu.memory_space<smem>>
    %5 = vector.broadcast %4 : f32 to vector<16x128xf32>
    %6 = arith.mulf %3, %5 : vector<16x128xf32>
    %c0_3 = arith.constant 0 : index
    %c0_4 = arith.constant 0 : index
    %7 = vector.load %arg4[%c0_3, %c0_4] : memref<128x128xf32, #tpu.memory_space<vmem>>, vector<128x128xf32>
    %cst = arith.constant dense<0.000000e+00> : vector<16x128xf32>
    %8 = tpu.matmul %6, %7, %cst {dimension_numbers = #tpu.dot_dimension_numbers<[1], [0], [0], [1], [0, 0, 1, 1], [], []>} : vector<16x128xf32>, vector<128x128xf32>, vector<16x128xf32> -> vector<16x128xf32>
    %9 = tpu.iota {dimensions = array<i32: 1>} : vector<16x128xi32>
    %c128_i32 = arith.constant 128 : i32
    %10 = arith.muli %arg1, %c128_i32 : i32
    %11 = vector.broadcast %10 : i32 to vector<16x128xi32>
    %12 = arith.addi %9, %11 : vector<16x128xi32>
    %c24_i32 = arith.constant 24 : i32
    %13 = vector.broadcast %c24_i32 : i32 to vector<16x128xi32>
    %14 = arith.cmpi slt, %12, %13 : vector<16x128xi32>
    %cst_5 = arith.constant -1.000000e+30 : f32
    %15 = vector.broadcast %cst_5 : f32 to vector<16x128xf32>
    %16 = arith.select %14, %8, %15 : vector<16x128xi1>, vector<16x128xf32>
    %c0_6 = arith.constant 0 : index
    %c0_7 = arith.constant 0 : index
    %17 = vector.load %arg5[%c0_6, %c0_7] : memref<16x1xi32, #tpu.memory_space<vmem>>, vector<16x1xi32>
    %18 = vector.broadcast %17 : vector<16x1xi32> to vector<16x128xi32>
    %19 = arith.cmpi eq, %12, %18 : vector<16x128xi32>
    %c0_8 = arith.constant 0 : index
    %c0_9 = arith.constant 0 : index
    %20 = vector.load %arg9[%c0_8, %c0_9] : memref<16x1xf32, #tpu.memory_space<vmem>>, vector<16x1xf32>
    %cst_10 = arith.constant 0.000000e+00 : f32
    %21 = vector.broadcast %cst_10 : f32 to vector<16x128xf32>
    %22 = arith.select %19, %16, %21 : vector<16x128xi1>, vector<16x128xf32>
    %cst_11 = arith.constant dense<0.000000e+00> : vector<16xf32>
    %23 = vector.multi_reduction <add>, %22, %cst_11 [1] : vector<16x128xf32> to vector<16xf32>
    %24 = vector.shape_cast %23 : vector<16xf32> to vector<16x1xf32>
    %25 = arith.addf %20, %24 : vector<16x1xf32>
    %c0_12 = arith.constant 0 : index
    %c0_13 = arith.constant 0 : index
    %26 = vector.load %arg9[%c0_12, %c0_13] : memref<16x1xf32, #tpu.memory_space<vmem>>, vector<16x1xf32>
    tpu.vector_store %arg9[%c0_12, %c0_13], %25 {strides = array<i32>} : memref<16x1xf32, #tpu.memory_space<vmem>>, vector<16x1xf32>,
    %c0_14 = arith.constant 0 : index
    %c0_15 = arith.constant 0 : index
    %27 = vector.load %arg7[%c0_14, %c0_15] : memref<16x1xf32, #tpu.memory_space<vmem>>, vector<16x1xf32>
    %cst_16 = arith.constant dense<0xFF800000> : vector<16xf32>
    %28 = vector.multi_reduction <maximumf>, %16, %cst_16 [1] : vector<16x128xf32> to vector<16xf32>
    %29 = vector.shape_cast %28 : vector<16xf32> to vector<16x1xf32>
    %30 = arith.maximumf %27, %29 : vector<16x1xf32>
    %c0_17 = arith.constant 0 : index
    %c0_18 = arith.constant 0 : index
    %31 = vector.load %arg8[%c0_17, %c0_18] : memref<16x1xf32, #tpu.memory_space<vmem>>, vector<16x1xf32>
    %32 = arith.subf %27, %30 : vector<16x1xf32>
    %33 = math.exp %32 : vector<16x1xf32>
    %34 = arith.mulf %31, %33 : vector<16x1xf32>
    %35 = vector.broadcast %30 : vector<16x1xf32> to vector<16x128xf32>
    %36 = arith.subf %16, %35 : vector<16x128xf32>
    %37 = math.exp %36 : vector<16x128xf32>
    %cst_19 = arith.constant dense<0.000000e+00> : vector<16xf32>
    %38 = vector.multi_reduction <add>, %37, %cst_19 [1] : vector<16x128xf32> to vector<16xf32>
    %39 = vector.shape_cast %38 : vector<16xf32> to vector<16x1xf32>
    %40 = arith.addf %34, %39 : vector<16x1xf32>
    %c0_20 = arith.constant 0 : index
    %c0_21 = arith.constant 0 : index
    %41 = vector.load %arg8[%c0_20, %c0_21] : memref<16x1xf32, #tpu.memory_space<vmem>>, vector<16x1xf32>
    tpu.vector_store %arg8[%c0_20, %c0_21], %40 {strides = array<i32>} : memref<16x1xf32, #tpu.memory_space<vmem>>, vector<16x1xf32>,
    %c0_22 = arith.constant 0 : index
    %c0_23 = arith.constant 0 : index
    %42 = vector.load %arg7[%c0_22, %c0_23] : memref<16x1xf32, #tpu.memory_space<vmem>>, vector<16x1xf32>
    tpu.vector_store %arg7[%c0_22, %c0_23], %30 {strides = array<i32>} : memref<16x1xf32, #tpu.memory_space<vmem>>, vector<16x1xf32>,
    %c0_i32_24 = arith.constant 0 : i32
    %43 = arith.cmpi eq, %arg1, %c0_i32_24 : i32
    %44 = arith.extui %43 : i1 to i32
    %c0_i32_25 = arith.constant 0 : i32
    %45 = arith.cmpi ne, %44, %c0_i32_25 : i32
    scf.if %45 {
      %c0_i32_26 = arith.constant 0 : i32
      %46 = vector.broadcast %c0_i32_26 : i32 to vector<16x1xi32>
      %47 = arith.cmpi sge, %17, %46 : vector<16x1xi32>
      %48 = arith.extui %47 : vector<16x1xi1> to vector<16x1xi32>
      %49 = arith.sitofp %48 : vector<16x1xi32> to vector<16x1xf32>
      %c0_27 = arith.constant 0 : index
      %c0_28 = arith.constant 0 : index
      %50 = vector.load %arg7[%c0_27, %c0_28] : memref<16x1xf32, #tpu.memory_space<vmem>>, vector<16x1xf32>
      %c0_29 = arith.constant 0 : index
      %c0_30 = arith.constant 0 : index
      %51 = vector.load %arg8[%c0_29, %c0_30] : memref<16x1xf32, #tpu.memory_space<vmem>>, vector<16x1xf32>
      %52 = math.log %51 : vector<16x1xf32>
      %53 = arith.addf %50, %52 : vector<16x1xf32>
      %c0_31 = arith.constant 0 : index
      %c0_32 = arith.constant 0 : index
      %54 = vector.load %arg9[%c0_31, %c0_32] : memref<16x1xf32, #tpu.memory_space<vmem>>, vector<16x1xf32>
      %55 = arith.subf %53, %54 : vector<16x1xf32>
      %56 = arith.mulf %55, %49 : vector<16x1xf32>
      %c0_33 = arith.constant 0 : index
      %c0_34 = arith.constant 0 : index
      %57 = vector.load %arg6[%c0_33, %c0_34] : memref<16x1xf32, #tpu.memory_space<vmem>>, vector<16x1xf32>
      tpu.vector_store %arg6[%c0_33, %c0_34], %56 {strides = array<i32>} : memref<16x1xf32, #tpu.memory_space<vmem>>, vector<16x1xf32>,
    } else {
    }
    return
  }
  func.func @transform_0(%arg0: i32, %arg1: i32) -> i32 {
    %c0_i32 = arith.constant 0 : i32
    %c0_i32_0 = arith.constant 0 : i32
    return %c0_i32 : i32
  }
  func.func @transform_1(%arg0: i32, %arg1: i32) -> (i32, i32) {
    %c0_i32 = arith.constant 0 : i32
    %c0_i32_0 = arith.constant 0 : i32
    return %arg0, %c0_i32 : i32, i32
  }
  func.func @transform_2(%arg0: i32, %arg1: i32) -> (i32, i32) {
    %c0_i32 = arith.constant 0 : i32
    %c0_i32_0 = arith.constant 0 : i32
    return %c0_i32, %arg1 : i32, i32
  }
  func.func @transform_3(%arg0: i32, %arg1: i32) -> (i32, i32) {
    %c0_i32 = arith.constant 0 : i32
    %c0_i32_0 = arith.constant 0 : i32
    return %arg0, %c0_i32 : i32, i32
  }
  func.func @transform_4(%arg0: i32, %arg1: i32) -> (i32, i32) {
    %c0_i32 = arith.constant 0 : i32
    %c0_i32_0 = arith.constant 0 : i32
    return %arg0, %c0_i32 : i32, i32
  }
}

</mosaic_0001>

<bundles_post_ra>
// kernel: loim_loss_forward.1
= control target key start
LH: loop header
LB: loop body
LE: loop exit
PB: predicated region body
PF: predicated region fallthrough
CT: control target
= control target key end

     0   :  { %10 = vsyncpa [#allocation7], 0  ;;  %s344_s15 = smov [#allocation6]   ;;  %s427_s0 = inlined_call_operand.<no memory space> [shape: f32[1], index: 0, kind: input, shape index: {}]   ;;  %s428_s1 = inlined_call_operand.vmem [shape: f32[16,128], index: 1, kind: input, shape index: {}]   ;;  %s429_s2 = inlined_call_operand.hbm [shape: f32[128,128], index: 2, kind: input, shape index: {}]   ;;  %s430_s3 = inlined_call_operand.vmem [shape: s32[16,1], index: 3, kind: input, shape index: {}]   ;;  %s431_s4 = inlined_call_operand.vmem [shape: f32[16,1], index: 4, kind: output, shape index: {}]  }
   0x1   :  { %s20_s16 = sshll.u32 %s344_s15, 4  ;;  %s21_s16 = int_to_ptr.vmem [resolvable:$true] %s20_s16 }
   0x2   :  { %s330_s17 = scalar_lea.vmem %s21_s16, 2048  ;;  %p335_p1 = scmp.lt.s32.totalorder %s21_s16, %s21_s16 }
   0x3   :  { %p331_p0 = scmp.ne.s32.totalorder %s21_s16, %s330_s17  ;;  %p336_p2 = scmp.lt.s32.totalorder %s330_s17, %s330_s17 }
   0x5   :  { %p337_p3 = por %p336_p2, %p335_p1 }
   0x7   :  { %p338_p4 = pnand %p337_p3, %p331_p0 }
   0x9   :  { %341 = shalt.err (!%p338_p4)
}
   0xa   :  { %s345_s18 = smov 128   ;;  %s346_s19 = smov 8  }
   0xb   :  { %26 = dma.hbm_to_vmem [thread:$0]  %s429_s2, 2048, %s21_s16, [#allocation7], %s345_s18, %s345_s18, %s346_s19  }
   0xc   :  { %342 = dma.done.wait [#allocation7], 2048  }
   0xd   :  { %343 = vsyncadd [#allocation7], 4294965248  ;;  %v64_v0 = vld [vmem:[#allocation6 + $0x78] sm:$0xff]  ;;  %v63_v1 = vld [vmem:[#allocation6 + $0x70] sm:$0xff]  ;;  %v46_v3 = vstv %s427_s0  ;;  %v347_v21 = vmov 0   ;;  %vm36_vm0 = vcmask 7168   ;;  %v140_v24 = vlaneseq }
   0xe   :  { %267 = vmatprep.subr.mxu0 %v64_v0  ;;  %v62_v2 = vld [vmem:[#allocation6 + $0x68] sm:$0xff]  ;;  %v61_v4 = vld [vmem:[#allocation6 + $0x60] sm:$0xff]  ;;  %v43_v5 = vld [vmem:[%s428_s1] sm:$0xff]  ;;  %309 = vset.pattern.permute.xlu0 %v347_v21  ;;  %v348_v22 = vmov -1e+30   ;;  %v349_v23 = vmov 0.0  }
   0xf   :  { %268 = vmatpush3.msra.mxu0 %v64_v0  ;;  %v60_v6 = vld [vmem:[#allocation6 + $0x58] sm:$0xff]  ;;  %v47_v7 = vmul.f32 %v46_v3, %v43_v5  ;;  %v59_v8 = vld [vmem:[#allocation6 + $0x50] sm:$0xff]  ;;  %v58_v9 = vld [vmem:[#allocation6 + $0x48] sm:$0xff]  ;;  %308 = vset.pattern.permute.xlu1 %v347_v21  ;;  %37 = vst.msk [vmem:[#allocation2] sm:$0xff] %vm36_vm0, %v348_v22  ;;  %v141_v25 = vand.u32 127, %v140_v24 }
  0x10   :  { %269 = vmatprep.subr.mxu0 %v63_v1  ;;  %v57_v10 = vld [vmem:[#allocation6 + $0x40] sm:$0xff]  ;;  %v56_v11 = vld [vmem:[#allocation6 + $0x38] sm:$0xff]  ;;  %v55_v12 = vld [vmem:[#allocation6 + $0x30] sm:$0xff]  ;;  %38 = vst.msk [vmem:[#allocation2 + $0x8] sm:$0xff] %vm36_vm0, %v348_v22 }
  0x11   :  { %270 = vmatpush3.msra.mxu0 %v63_v1  ;;  %299 = vmatprep.mubr.f32.mxu0 %v47_v7  ;;  %v54_v13 = vld [vmem:[#allocation6 + $0x28] sm:$0xff]  ;;  %v53_v14 = vld [vmem:[#allocation6 + $0x20] sm:$0xff]  ;;  %v52_v15 = vld [vmem:[#allocation6 + $0x18] sm:$0xff]  ;;  %39 = vst.msk [vmem:[#allocation3] sm:$0xff] %vm36_vm0, %v349_v23  ;;  %vm145_vm1 = vcmp.lt.s32.totalorder %v141_v25, 24 }
  0x12   :  { %271 = vmatprep.subr.mxu0 %v62_v2  ;;  %v51_v16 = vld [vmem:[#allocation6 + $0x10] sm:$0xff]  ;;  %v50_v17 = vld [vmem:[#allocation6 + $0x8] sm:$0xff]  ;;  %v44_v18 = vld [vmem:[%s428_s1 + $0x8] sm:$0xff]  ;;  %40 = vst.msk [vmem:[#allocation3 + $0x8] sm:$0xff] %vm36_vm0, %v349_v23 }
  0x13   :  { %272 = vmatpush3.msra.mxu0 %v62_v2  ;;  %v49_v19 = vld [vmem:[#allocation6] sm:$0xff]  ;;  %v48_v20 = vmul.f32 %v46_v3, %v44_v18  ;;  %41 = vst.msk [vmem:[#allocation4] sm:$0xff] %vm36_vm0, %v349_v23  ;;  %42 = vst.msk [vmem:[#allocation4 + $0x8] sm:$0xff] %vm36_vm0, %v349_v23  ;;  %v400_v30 = vld [vmem:[%s430_s3] sm:$0xff] }
  0x14   :  { %273 = vmatprep.subr.mxu0 %v61_v4  ;;  %v408_v39 = vld [vmem:[%s430_s3 + $0x8] sm:$0xff]  ;;  %vm218_vm4 = vcmp.ge.s32.totalorder %v400_v30, 0 }
  0x15   :  { %274 = vmatpush3.msra.mxu0 %v61_v4  ;;  %vm219_vm5 = vcmp.ge.s32.totalorder %v408_v39, 0 }
  0x16   :  { %275 = vmatprep.subr.mxu0 %v60_v6  ;;  %v171_v31 = vld [vmem:[#allocation2] sm:$0xff] }
  0x17   :  { %276 = vmatpush3.msra.mxu0 %v60_v6  ;;  %v172_v34 = vld [vmem:[#allocation2 + $0x8] sm:$0xff] }
  0x18   :  { %277 = vmatprep.subr.mxu0 %v59_v8  ;;  %v179_v58 = vld [vmem:[#allocation3] sm:$0xff] }
  0x19   :  { %278 = vmatpush3.msra.mxu0 %v59_v8  ;;  %v180_v62 = vld [vmem:[#allocation3 + $0x8] sm:$0xff] }
  0x1a   :  { %279 = vmatprep.subr.mxu0 %v58_v9  ;;  %v158_v51 = vld [vmem:[#allocation4] sm:$0xff]  ;;  %v159_v3 = vld [vmem:[#allocation4 + $0x8] sm:$0xff] }
  0x1b   :  { %280 = vmatpush3.msra.mxu0 %v58_v9 }
  0x1c   :  { %281 = vmatprep.subr.mxu0 %v57_v10 }
  0x1d   :  { %282 = vmatpush3.msra.mxu0 %v57_v10 }
  0x1e   :  { %283 = vmatprep.subr.mxu0 %v56_v11 }
  0x1f   :  { %284 = vmatpush3.msra.mxu0 %v56_v11 }
  0x20   :  { %285 = vmatprep.subr.mxu0 %v55_v12 }
  0x21   :  { %286 = vmatpush3.msra.mxu0 %v55_v12 }
  0x22   :  { %287 = vmatprep.subr.mxu0 %v54_v13 }
  0x23   :  { %288 = vmatpush3.msra.mxu0 %v54_v13  ;;  %v247_v13 = vsel %vm218_vm4, 1.0, %v349_v23 }
  0x24   :  { %289 = vmatprep.subr.mxu0 %v53_v14 }
  0x25   :  { %290 = vmatpush3.msra.mxu0 %v53_v14 }
  0x26   :  { %291 = vmatprep.subr.mxu0 %v52_v15 }
  0x27   :  { %292 = vmatpush3.msra.mxu0 %v52_v15 }
  0x28   :  { %293 = vmatprep.subr.mxu0 %v51_v16 }
  0x29   :  { %294 = vmatpush3.msra.mxu0 %v51_v16 }
  0x2a   :  { %295 = vmatprep.subr.mxu0 %v50_v17 }
  0x2b   :  { %296 = vmatpush3.msra.mxu0 %v50_v17 }
  0x2c   :  { %297 = vmatprep.subr.mxu0 %v49_v19 }
  0x2d   :  { %298 = vmatpush3.msra.mxu0 %v49_v19 }
  0x2e   :  { %300 = vmatmul.mubr.f32.vlgmr.msra.gmra.mxu0 %v48_v20  ;;  %v248_v20 = vsel %vm219_vm5, 1.0, %v349_v23 }
  0xee   :  { %v301_v26 = vpop.f32.mrf.mxu0 }
  0xef   :  { %v147_v29 = vsel %vm145_vm1, %v301_v26, -1e+30 }
  0xf0   :  { %v131_v27 = vpop.f32.mrf.mxu0 }
  0xf1   :  { %v146_v28 = vsel %vm145_vm1, %v131_v27, -1e+30 }
  0xf2   :  { %173 = vmax.xlane.f32.xlu0 %v146_v28 }
  0xf6   :  { %175 = vmax.xlane.f32.xlu0 %v147_v29 }
 0x10c   :  { %151 = vperm.xlu0 %309, %v400_v30  }
 0x17b   :  { %v174_v32 = vpop.xlane.xlu0 %173 }
 0x17c   :  { %v177_v33 = vmax.f32 %v171_v31, %v174_v32 }
 0x17e   :  { %v181_v35 = vsub.f32 %v171_v31, %v177_v33  ;;  %213 = vst.msk [vmem:[#allocation2] sm:$0xff] %vm36_vm0, %v177_v33  ;;  %191 = vperm.xlu1 %308, %v177_v33  }
 0x17f   :  { %v176_v36 = vpop.xlane.xlu0 %175 }
 0x180   :  { %v178_v37 = vmax.f32 %v172_v34, %v176_v36  ;;  %v183_v55 = vmul.f32 1.442695, %v181_v35 }
 0x182   :  { %v182_v38 = vsub.f32 %v172_v34, %v178_v37  ;;  %214 = vst.msk [vmem:[#allocation2 + $0x8] sm:$0xff] %vm36_vm0, %v178_v37  ;;  %196 = vperm.xlu1 %308, %v178_v37  }
 0x184   :  { %v185_v56 = vmul.f32 1.442695, %v182_v38 }
 0x185   :  { %v224_v10 = vld [vmem:[#allocation2] sm:$0xff] }
 0x186   :  { %154 = vperm.xlu1 %308, %v408_v39  }
 0x187   :  { %v152_v40 = vpop.permute.xlu0 %151 }
 0x188   :  { %vm156_vm2 = vcmp.eq.s32.totalorder %v141_v25, %v152_v40 }
 0x189   :  { %v160_v41 = vsel %vm156_vm2, %v146_v28, 0.0  ;;  %v225_v17 = vld [vmem:[#allocation2 + $0x8] sm:$0xff] }
 0x18a   :  { %162 = vadd.xlane.f32.xlu0 %v160_v41 }
 0x1f9   :  { %v192_v42 = vpop.permute.xlu1 %191 }
 0x1fa   :  { %v199_v43 = vsub.f32 %v146_v28, %v192_v42 }
 0x1fc   :  { %v201_v44 = vmul.f32 1.442695, %v199_v43 }
 0x1fd   :  { %v197_v45 = vpop.permute.xlu1 %196 }
 0x1fe   :  { %310 = vpow2.f32 %v201_v44  ;;  %v200_v46 = vsub.f32 %v147_v29, %v197_v45 }
 0x200   :  { %v203_v47 = vmul.f32 1.442695, %v200_v46 }
 0x201   :  { %v155_v49 = vpop.permute.xlu1 %154 }
 0x202   :  { %312 = vpow2.f32 %v203_v47  ;;  %vm157_vm3 = vcmp.eq.s32.totalorder %v141_v25, %v155_v49 }
 0x203   :  { %v161_v53 = vsel %vm157_vm3, %v147_v29, 0.0  ;;  %314 = vpow2.f32 %v183_v55 }
 0x204   :  { %316 = vpow2.f32 %v185_v56 }
 0x20b   :  { %v311_v48 = vpop.eup %310 }
 0x20c   :  { %205 = vadd.xlane.f32.xlu1 %v311_v48 }
 0x20f   :  { %v313_v50 = vpop.eup %312 }
 0x210   :  { %207 = vadd.xlane.f32.xlu1 %v313_v50  ;;  %v315_v57 = vpop.eup %314 }
 0x211   :  { %v187_v59 = vmul.f32 %v315_v57, %v179_v58  ;;  %v317_v60 = vpop.eup %316 }
 0x212   :  { %v188_v0 = vmul.f32 %v317_v60, %v180_v62 }
 0x213   :  { %v163_v52 = vpop.xlane.xlu0 %162 }
 0x214   :  { %v166_v54 = vadd.f32 %v163_v52, %v158_v51  ;;  %164 = vadd.xlane.f32.xlu1 %v161_v53 }
 0x216   :  { %169 = vst.msk [vmem:[#allocation4] sm:$0xff] %vm36_vm0, %v166_v54 }
 0x21d   :  { %v234_v14 = vld [vmem:[#allocation4] sm:$0xff] }
 0x295   :  { %v206_v61 = vpop.xlane.xlu1 %205 }
 0x296   :  { %v209_v63 = vadd.f32 %v206_v61, %v187_v59 }
 0x298   :  { %211 = vst.msk [vmem:[#allocation3] sm:$0xff] %vm36_vm0, %v209_v63 }
 0x299   :  { %v208_v1 = vpop.xlane.xlu1 %207 }
 0x29a   :  { %v210_v2 = vadd.f32 %v208_v1, %v188_v0 }
 0x29c   :  { %212 = vst.msk [vmem:[#allocation3 + $0x8] sm:$0xff] %vm36_vm0, %v210_v2 }
 0x29d   :  { %v165_v4 = vpop.xlane.xlu1 %164 }
 0x29e   :  { %v167_v5 = vadd.f32 %v165_v4, %v159_v3 }
 0x29f   :  { %v226_v6 = vld [vmem:[#allocation3] sm:$0xff] }
 0x2a0   :  { %318 = vlog2.f32 %v226_v6  ;;  %170 = vst.msk [vmem:[#allocation4 + $0x8] sm:$0xff] %vm36_vm0, %v167_v5 }
 0x2a3   :  { %v227_v7 = vld [vmem:[#allocation3 + $0x8] sm:$0xff] }
 0x2a4   :  { %320 = vlog2.f32 %v227_v7 }
 0x2a7   :  { %v235_v21 = vld [vmem:[#allocation4 + $0x8] sm:$0xff] }
 0x2ad   :  { %v319_v8 = vpop.eup %318 }
 0x2ae   :  { %v229_v9 = vmul.f32 0.6931472, %v319_v8 }
 0x2b0   :  { %v232_v11 = vadd.f32 %v229_v9, %v224_v10 }
 0x2b1   :  { %v321_v12 = vpop.eup %320 }
 0x2b2   :  { %v236_v15 = vsub.f32 %v232_v11, %v234_v14  ;;  %v231_v16 = vmul.f32 0.6931472, %v321_v12 }
 0x2b4   :  { %v238_v18 = vmul.f32 %v247_v13, %v236_v15  ;;  %v233_v19 = vadd.f32 %v231_v16, %v225_v17 }
 0x2b6   :  { %240 = vst.msk [vmem:[%s431_s4] sm:$0xff] %vm36_vm0, %v238_v18  ;;  %v237_v22 = vsub.f32 %v233_v19, %v235_v21 }
 0x2b8   :  { %v239_v24 = vmul.f32 %v248_v20, %v237_v22 }
 0x2ba   :  { %241 = vst.msk [vmem:[%s431_s4 + $0x8] sm:$0xff] %vm36_vm0, %v239_v24 }
 0x2bb   :  { %246 = vsyncpa [#allocation7], 1 }

</bundles_post_ra>
